<compile_context>
chip_gen: v7x
topology: tpu7x:2x2x1
jax: 0.10.0
libtpu: 0.0.40
codegen_flags: <defaults>
</compile_context>

<pallas_src>
import jax
import jax.numpy as jnp
from jax.experimental import pallas as pl
from jax.experimental.pallas import tpu as pltpu

INPUT_SIZE = 784
HIDDEN_SIZE = 500
NUM_CLASSES = 10

# (8,128)-aligned padded dims (pads are zeros -> results unchanged).
IN_PAD = 896     # 784 -> 7*128
HID_PAD = 512    # 500 -> 4*128
OUT_PAD = 128    # 10  -> 1*128 (lane-dense output block)

TB_CAP = 1024    # max batch-tile rows; ~8.5 MiB VMEM footprint at this size


def _round_up(n, m):
    return (n + m - 1) // m * m


def _mlp_kernel(x_ref, w1_ref, b1_ref, w2_ref, b2_ref, o_ref):
    # bf16 operands on the MXU, f32 accumulation; bias + ReLU on the VPU in f32.
    h = jnp.dot(x_ref[...], w1_ref[...], preferred_element_type=jnp.float32)
    h = jnp.maximum(h + b1_ref[...], 0.0)                       # (TB, HID_PAD) f32
    out = jnp.dot(h.astype(jnp.bfloat16), w2_ref[...],
                  preferred_element_type=jnp.float32)
    o_ref[...] = (out + b2_ref[...]).astype(o_ref.dtype)        # (TB, OUT_PAD)


def prepare_params(w1, b1, w2, b2):
    """One-time parameter prep: zero-pad to aligned shapes + bf16 weight cast.

    Hoisted out of the per-call forward (weights are static); cache the result.
    """
    w1p = jnp.pad(w1, ((0, IN_PAD - INPUT_SIZE),
                       (0, HID_PAD - HIDDEN_SIZE))).astype(jnp.bfloat16)
    b1p = jnp.pad(b1, (0, HID_PAD - HIDDEN_SIZE)).reshape(1, HID_PAD).astype(jnp.float32)
    w2p = jnp.pad(w2, ((0, HID_PAD - HIDDEN_SIZE),
                       (0, OUT_PAD - NUM_CLASSES))).astype(jnp.bfloat16)
    b2p = jnp.pad(b2, (0, OUT_PAD - NUM_CLASSES)).reshape(1, OUT_PAD).astype(jnp.float32)
    # TODO(synk): optional fp8 (v7x) / int8 (v5e-v6e) weight path with
    # per-output-channel scales folded into the f32 epilogue.
    return w1p, b1p, w2p, b2p


@jax.jit
def neural_net_forward(x, w1p, b1p, w2p, b2p):
    """relu(x @ w1 + b1) @ w2 + b2 as one batch-tiled Pallas kernel.

    x: [B, 784] f32; w1p/b1p/w2p/b2p: outputs of prepare_params().
    Returns [B, 10] f32.
    """
    B = x.shape[0]
    B8 = _round_up(B, 8)
    # At least 2 grid steps whenever the batch allows (keeps both v7x
    # TensorCores busy under dimension_semantics=("parallel",)); more steps
    # once B exceeds TB_CAP. TB = ceil(B8 / n_tiles) rounded to the sublane
    # multiple, so padded-batch waste is bounded by < 8 rows per tile.
    n_tiles = max(2 if B8 >= 16 else 1, pl.cdiv(B8, TB_CAP))
    TB = _round_up(pl.cdiv(B8, n_tiles), 8)
    B_pad = n_tiles * TB

    # Per-call activation prep only: pad batch + feature dim, cast to bf16.
    xp = jnp.pad(x, ((0, B_pad - B), (0, IN_PAD - INPUT_SIZE))).astype(jnp.bfloat16)

    flops = 2 * B_pad * (IN_PAD * HID_PAD + HID_PAD * OUT_PAD)
    bytes_accessed = (xp.size * 2 + w1p.size * 2 + w2p.size * 2
                      + b1p.size * 4 + b2p.size * 4 + B_pad * OUT_PAD * 4)

    out_pad = pl.pallas_call(
        _mlp_kernel,
        out_shape=jax.ShapeDtypeStruct((B_pad, OUT_PAD), jnp.float32),
        grid=(n_tiles,),
        in_specs=[
            pl.BlockSpec((TB, IN_PAD), lambda i: (i, 0)),         # x tile (pipelined)
            pl.BlockSpec((IN_PAD, HID_PAD), lambda i: (0, 0)),    # w1: VMEM-resident
            pl.BlockSpec((1, HID_PAD), lambda i: (0, 0)),         # b1: VMEM-resident
            pl.BlockSpec((HID_PAD, OUT_PAD), lambda i: (0, 0)),   # w2: VMEM-resident
            pl.BlockSpec((1, OUT_PAD), lambda i: (0, 0)),         # b2: VMEM-resident
        ],
        out_specs=pl.BlockSpec((TB, OUT_PAD), lambda i: (i, 0)),  # lane-dense store
        compiler_params=pltpu.CompilerParams(
            dimension_semantics=("parallel",),                    # 2 TCs on v7x
            vmem_limit_bytes=32 * 1024 * 1024,                    # v5e default is 16 MiB
        ),
        cost_estimate=pl.CostEstimate(
            flops=flops, transcendentals=0, bytes_accessed=bytes_accessed),
    )(xp, w1p, b1p, w2p, b2p)

    # TODO(synk): single-buffer the constant-index weight specs
    # (pipeline_mode=pl.Buffered(1)) if VMEM ever becomes the constraint.
    return out_pad[:B, :NUM_CLASSES]


def init_params(key):
    """Deterministic init mimicking PyTorch Linear default U(-1/sqrt(fan_in), ...)."""
    k1, k2, k3, k4 = jax.random.split(key, 4)
    bound1 = 1.0 / jnp.sqrt(INPUT_SIZE)
    bound2 = 1.0 / jnp.sqrt(HIDDEN_SIZE)
    w1 = jax.random.uniform(k1, (INPUT_SIZE, HIDDEN_SIZE), jnp.float32, -bound1, bound1)
    b1 = jax.random.uniform(k2, (HIDDEN_SIZE,), jnp.float32, -bound1, bound1)
    w2 = jax.random.uniform(k3, (HIDDEN_SIZE, NUM_CLASSES), jnp.float32, -bound2, bound2)
    b2 = jax.random.uniform(k4, (NUM_CLASSES,), jnp.float32, -bound2, bound2)
    return w1, b1, w2, b2


if __name__ == "__main__":
    key = jax.random.PRNGKey(0)
    k_params, k_x1, k_x2 = jax.random.split(key, 3)
    w1, b1, w2, b2 = init_params(k_params)

    # One-time parameter prep (pad + bf16 cast), reused across calls.
    w1p, b1p, w2p, b2p = prepare_params(w1, b1, w2, b2)
    w1p, b1p, w2p, b2p = jax.block_until_ready((w1p, b1p, w2p, b2p))

    def ref_fwd(x):
        # Pure-JAX f32 reference (same math as the PyTorch module's forward).
        return jnp.maximum(x @ w1 + b1, 0.0) @ w2 + b2

    # Small single-tile batch.
    batch = 8
    x = jax.random.normal(k_x1, (batch, INPUT_SIZE), jnp.float32)
    out = jax.block_until_ready(neural_net_forward(x, w1p, b1p, w2p, b2p))
    ref = ref_fwd(x)
    assert out.shape == (batch, NUM_CLASSES)
    # Tolerance loosened to cover bf16 weight/activation quantization.
    assert jnp.allclose(out, ref, atol=3e-2, rtol=3e-2), \
        f"max abs err = {float(jnp.max(jnp.abs(out - ref)))}"

    # Non-multiple-of-tile batch exercising the >=2-tile (dual-TC) grid path.
    batch2 = 40
    x2 = jax.random.normal(k_x2, (batch2, INPUT_SIZE), jnp.float32)
    out2 = jax.block_until_ready(neural_net_forward(x2, w1p, b1p, w2p, b2p))
    ref2 = ref_fwd(x2)
    assert out2.shape == (batch2, NUM_CLASSES)
    assert jnp.allclose(out2, ref2, atol=3e-2, rtol=3e-2), \
        f"max abs err = {float(jnp.max(jnp.abs(out2 - ref2)))}"

    print("KERNEL_OK")
</pallas_src>

<mosaic_0001>
module attributes {stable_mosaic.version = 11 : i64} {
  func.func @_mlp_kernel(%arg0: i32, %arg1: memref<8x896xbf16, #tpu.memory_space<vmem>>, %arg2: memref<896x512xbf16, #tpu.memory_space<vmem>>, %arg3: memref<1x512xf32, #tpu.memory_space<vmem>>, %arg4: memref<512x128xbf16, #tpu.memory_space<vmem>>, %arg5: memref<1x128xf32, #tpu.memory_space<vmem>>, %arg6: memref<8x128xf32, #tpu.memory_space<vmem>>) attributes {dimension_semantics = [#tpu.dimension_semantics<parallel>], iteration_bounds = array<i64: 1>, scalar_prefetch = 0 : i64, scratch_operands = 0 : i64, tpu.core_type = #tpu.core_type<tc>, window_params = [{transform_indices = @transform_0, window_bounds = array<i64: 8, 896>}, {pipeline_mode = #tpu.pipeline_mode<synchronous>, transform_indices = @transform_1, window_bounds = array<i64: 896, 512>}, {pipeline_mode = #tpu.pipeline_mode<synchronous>, transform_indices = @transform_2, window_bounds = array<i64: 1, 512>}, {pipeline_mode = #tpu.pipeline_mode<synchronous>, transform_indices = @transform_3, window_bounds = array<i64: 512, 128>}, {pipeline_mode = #tpu.pipeline_mode<synchronous>, transform_indices = @transform_4, window_bounds = array<i64: 1, 128>}, {transform_indices = @transform_5, window_bounds = array<i64: 8, 128>}]} {
    %c0 = arith.constant 0 : index
    %c0_0 = arith.constant 0 : index
    %0 = vector.load %arg1[%c0, %c0_0] : memref<8x896xbf16, #tpu.memory_space<vmem>>, vector<8x896xbf16>
    %c0_1 = arith.constant 0 : index
    %c0_2 = arith.constant 0 : index
    %1 = vector.load %arg2[%c0_1, %c0_2] : memref<896x512xbf16, #tpu.memory_space<vmem>>, vector<896x512xbf16>
    %cst = arith.constant dense<0.000000e+00> : vector<8x512xf32>
    %2 = tpu.matmul %0, %1, %cst {dimension_numbers = #tpu.dot_dimension_numbers<[1], [0], [0], [1], [0, 0, 1, 1], [], []>} : vector<8x896xbf16>, vector<896x512xbf16>, vector<8x512xf32> -> vector<8x512xf32>
    %c0_3 = arith.constant 0 : index
    %c0_4 = arith.constant 0 : index
    %3 = vector.load %arg3[%c0_3, %c0_4] : memref<1x512xf32, #tpu.memory_space<vmem>>, vector<1x512xf32>
    %4 = vector.broadcast %3 : vector<1x512xf32> to vector<8x512xf32>
    %5 = arith.addf %2, %4 : vector<8x512xf32>
    %cst_5 = arith.constant 0.000000e+00 : f32
    %6 = vector.broadcast %cst_5 : f32 to vector<8x512xf32>
    %7 = arith.maximumf %5, %6 : vector<8x512xf32>
    %8 = arith.truncf %7 : vector<8x512xf32> to vector<8x512xbf16>
    %c0_6 = arith.constant 0 : index
    %c0_7 = arith.constant 0 : index
    %9 = vector.load %arg4[%c0_6, %c0_7] : memref<512x128xbf16, #tpu.memory_space<vmem>>, vector<512x128xbf16>
    %cst_8 = arith.constant dense<0.000000e+00> : vector<8x128xf32>
    %10 = tpu.matmul %8, %9, %cst_8 {dimension_numbers = #tpu.dot_dimension_numbers<[1], [0], [0], [1], [0, 0, 1, 1], [], []>} : vector<8x512xbf16>, vector<512x128xbf16>, vector<8x128xf32> -> vector<8x128xf32>
    %c0_9 = arith.constant 0 : index
    %c0_10 = arith.constant 0 : index
    %11 = vector.load %arg5[%c0_9, %c0_10] : memref<1x128xf32, #tpu.memory_space<vmem>>, vector<1x128xf32>
    %12 = vector.broadcast %11 : vector<1x128xf32> to vector<8x128xf32>
    %13 = arith.addf %10, %12 : vector<8x128xf32>
    %c0_11 = arith.constant 0 : index
    %c0_12 = arith.constant 0 : index
    %14 = vector.load %arg6[%c0_11, %c0_12] : memref<8x128xf32, #tpu.memory_space<vmem>>, vector<8x128xf32>
    tpu.vector_store %arg6[%c0_11, %c0_12], %13 {strides = array<i32>} : memref<8x128xf32, #tpu.memory_space<vmem>>, vector<8x128xf32>,
    return
  }
  func.func @transform_0(%arg0: i32) -> (i32, i32) {
    %c0_i32 = arith.constant 0 : i32
    %c0_i32_0 = arith.constant 0 : i32
    return %arg0, %c0_i32 : i32, i32
  }
  func.func @transform_1(%arg0: i32) -> (i32, i32) {
    %c0_i32 = arith.constant 0 : i32
    %c0_i32_0 = arith.constant 0 : i32
    %c0_i32_1 = arith.constant 0 : i32
    return %c0_i32, %c0_i32_0 : i32, i32
  }
  func.func @transform_2(%arg0: i32) -> (i32, i32) {
    %c0_i32 = arith.constant 0 : i32
    %c0_i32_0 = arith.constant 0 : i32
    %c0_i32_1 = arith.constant 0 : i32
    return %c0_i32, %c0_i32_0 : i32, i32
  }
  func.func @transform_3(%arg0: i32) -> (i32, i32) {
    %c0_i32 = arith.constant 0 : i32
    %c0_i32_0 = arith.constant 0 : i32
    %c0_i32_1 = arith.constant 0 : i32
    return %c0_i32, %c0_i32_0 : i32, i32
  }
  func.func @transform_4(%arg0: i32) -> (i32, i32) {
    %c0_i32 = arith.constant 0 : i32
    %c0_i32_0 = arith.constant 0 : i32
    %c0_i32_1 = arith.constant 0 : i32
    return %c0_i32, %c0_i32_0 : i32, i32
  }
  func.func @transform_5(%arg0: i32) -> (i32, i32) {
    %c0_i32 = arith.constant 0 : i32
    %c0_i32_0 = arith.constant 0 : i32
    return %arg0, %c0_i32 : i32, i32
  }
}

</mosaic_0001>

<bundles_post_ra>
// kernel: neural_net_forward.1
= control target key start
LH: loop header
LB: loop body
LE: loop exit
PB: predicated region body
PF: predicated region fallthrough
CT: control target
= control target key end

     0   :  { %10 = vsyncpa [#allocation3], 0  ;;  %s3036_s0 = inlined_call_operand.vmem [shape: bf16[8,896], index: 0, kind: input, shape index: {}]   ;;  %s3037_s1 = inlined_call_operand.hbm [shape: bf16[896,512], index: 1, kind: input, shape index: {}]   ;;  %s3038_s2 = inlined_call_operand.vmem [shape: f32[1,512], index: 2, kind: input, shape index: {}]   ;;  %s3039_s3 = inlined_call_operand.hbm [shape: bf16[512,128], index: 3, kind: input, shape index: {}]   ;;  %s3040_s4 = inlined_call_operand.vmem [shape: f32[1,128], index: 4, kind: input, shape index: {}]   ;;  %s3041_s5 = inlined_call_operand.hbm [shape: f32[8,128], index: 5, kind: output, shape index: {}]  }
   0x1   :  { %11 = vsyncpa [#allocation6], 0 }
   0x2   :  { %12 = vsyncpa [#allocation4], 0  ;;  %s2932_s18 = smov [#allocation2]   ;;  %s2860_s22 = scalar_lea.hbm %s3037_s1, 28672 }
   0x3   :  { %s20_s19 = sshll.u32 %s2932_s18, 4  ;;  %p2861_p0 = scmp.ne.s32.totalorder %s3037_s1, %s2860_s22  ;;  %s21_s19 = int_to_ptr.vmem [resolvable:$true] %s20_s19 }
   0x4   :  { %p2864_p1 = scmp.lt.u32.totalorder %s2860_s22, %s3037_s1 }
   0x6   :  { %p2866_p2 = pnand %p2864_p1, %p2861_p0 }
   0x8   :  { %2869 = shalt.err (!%p2866_p2)
}
   0x9   :  { %s2870_s27 = scalar_lea.vmem %s21_s19, 28672  ;;  %p2875_p4 = scmp.lt.s32.totalorder %s21_s19, %s21_s19 }
   0xa   :  { %p2871_p3 = scmp.ne.s32.totalorder %s21_s19, %s2870_s27  ;;  %p2876_p5 = scmp.lt.s32.totalorder %s2870_s27, %s2870_s27 }
   0xc   :  { %p2877_p6 = por %p2876_p5, %p2875_p4 }
   0xe   :  { %p2878_p7 = pnand %p2877_p6, %p2871_p3 }
  0x10   :  { %2881 = shalt.err (!%p2878_p7)
}
  0x11   :  { %s2933_s28 = smov 256   ;;  %s2934_s29 = smov 16  }
  0x12   :  { %26 = dma.hbm_to_vmem [thread:$0]  %s3037_s1, 28672, %s21_s19, [#allocation3], %s2933_s28, %s2933_s28, %s2934_s29  }
  0x13   :  { %s2935_s7 = smov [#allocation5]   ;;  %s2882_s11 = scalar_lea.hbm %s3039_s3, 4096 }
  0x14   :  { %s34_s8 = sshll.u32 %s2935_s7, 4  ;;  %p2883_p8 = scmp.ne.s32.totalorder %s3039_s3, %s2882_s11  ;;  %s35_s8 = int_to_ptr.vmem [resolvable:$true] %s34_s8 }
  0x15   :  { %p2886_p9 = scmp.lt.u32.totalorder %s2882_s11, %s3039_s3 }
  0x17   :  { %p2888_p10 = pnand %p2886_p9, %p2883_p8 }
  0x19   :  { %2891 = shalt.err (!%p2888_p10)
}
  0x1a   :  { %s2892_s16 = scalar_lea.vmem %s35_s8, 4096  ;;  %p2897_p12 = scmp.lt.s32.totalorder %s35_s8, %s35_s8 }
  0x1b   :  { %p2893_p11 = scmp.ne.s32.totalorder %s35_s8, %s2892_s16  ;;  %p2898_p13 = scmp.lt.s32.totalorder %s2892_s16, %s2892_s16 }
  0x1d   :  { %p2899_p0 = por %p2898_p13, %p2897_p12 }
  0x1f   :  { %p2900_p1 = pnand %p2899_p0, %p2893_p11 }
  0x21   :  { %2903 = shalt.err (!%p2900_p1)
}
  0x22   :  { %s2936_s1 = smov 64   ;;  %s2937_s17 = smov 4  }
  0x23   :  { %40 = dma.hbm_to_vmem [thread:$0]  %s3039_s3, 4096, %s35_s8, [#allocation6], %s2936_s1, %s2936_s1, %s2937_s17  }
  0x24   :  { %2926 = dma.done.wait [#allocation3], 28672  }
  0x25   :  { %2927 = vsyncadd [#allocation3], 4294938624 }
  0x26   :  { %2928 = dma.done.wait [#allocation6], 4096  }
  0x27   :  { %2929 = vsyncadd [#allocation6], 4294963200  ;;  %v2485_v0 = vld [vmem:[#allocation2 + $0x4] ss:$16 sps:$4 sm:$0xff]   ;;  %v2487_v1 = vld [vmem:[#allocation2 + $0xc] ss:$16 sps:$4 sm:$0xff]  }
  0x28   :  { %1445 = vmatprep.subr.bf16.mxu0 %v2485_v0  ;;  %v2489_v2 = vld [vmem:[#allocation2] ss:$16 sps:$4 sm:$0xff]   ;;  %v2490_v3 = vld [vmem:[#allocation2 + $0x8] ss:$16 sps:$4 sm:$0xff]   ;;  %1609 = vmatprep.subr.bf16.mxu1 %v2487_v1  ;;  %v2491_v4 = vld [vmem:[#allocation2 + $0x24] ss:$16 sps:$4 sm:$0xff]  }
  0x29   :  { %1446 = vmatpush1.bf16.msra.mxu0 %v2489_v2  ;;  %1610 = vmatpush1.bf16.msra.mxu1 %v2490_v3  ;;  %v2493_v5 = vld [vmem:[#allocation2 + $0x2c] ss:$16 sps:$4 sm:$0xff]   ;;  %v2495_v6 = vld [vmem:[#allocation2 + $0x20] ss:$16 sps:$4 sm:$0xff]   ;;  %v2496_v7 = vld [vmem:[#allocation2 + $0x28] ss:$16 sps:$4 sm:$0xff]  }
  0x2a   :  { %1447 = vmatprep.subr.bf16.mxu0 %v2491_v4  ;;  %1611 = vmatprep.subr.bf16.mxu1 %v2493_v5  ;;  %v2497_v8 = vld [vmem:[#allocation2 + $0x44] ss:$16 sps:$4 sm:$0xff]   ;;  %v2499_v9 = vld [vmem:[#allocation2 + $0x4c] ss:$16 sps:$4 sm:$0xff]   ;;  %v2501_v10 = vld [vmem:[#allocation2 + $0x40] ss:$16 sps:$4 sm:$0xff]  }
  0x2b   :  { %v2502_v11 = vld [vmem:[#allocation2 + $0x48] ss:$16 sps:$4 sm:$0xff]   ;;  %v2503_v12 = vld [vmem:[#allocation2 + $0x64] ss:$16 sps:$4 sm:$0xff]   ;;  %v2505_v13 = vld [vmem:[#allocation2 + $0x6c] ss:$16 sps:$4 sm:$0xff]  }
  0x2c   :  { %v2507_v14 = vld [vmem:[#allocation2 + $0x60] ss:$16 sps:$4 sm:$0xff]   ;;  %v2508_v15 = vld [vmem:[#allocation2 + $0x68] ss:$16 sps:$4 sm:$0xff]   ;;  %v2509_v16 = vld [vmem:[#allocation2 + $0x84] ss:$16 sps:$4 sm:$0xff]  }
  0x2d   :  { %1448 = vmatpush1.bf16.msra.mxu0 %v2495_v6  ;;  %1612 = vmatpush1.bf16.msra.mxu1 %v2496_v7  ;;  %v2511_v17 = vld [vmem:[#allocation2 + $0x8c] ss:$16 sps:$4 sm:$0xff]   ;;  %v2513_v18 = vld [vmem:[#allocation2 + $0x80] ss:$16 sps:$4 sm:$0xff]   ;;  %v2514_v19 = vld [vmem:[#allocation2 + $0x88] ss:$16 sps:$4 sm:$0xff]  }
  0x2e   :  { %1449 = vmatprep.subr.bf16.mxu0 %v2497_v8  ;;  %1613 = vmatprep.subr.bf16.mxu1 %v2499_v9  ;;  %v2515_v20 = vld [vmem:[#allocation2 + $0xa4] ss:$16 sps:$4 sm:$0xff]   ;;  %v2517_v21 = vld [vmem:[#allocation2 + $0xac] ss:$16 sps:$4 sm:$0xff]   ;;  %v2519_v22 = vld [vmem:[#allocation2 + $0xa0] ss:$16 sps:$4 sm:$0xff]  }
  0x2f   :  { %v2520_v23 = vld [vmem:[#allocation2 + $0xa8] ss:$16 sps:$4 sm:$0xff]   ;;  %v2521_v24 = vld [vmem:[#allocation2 + $0xc4] ss:$16 sps:$4 sm:$0xff]   ;;  %v2523_v25 = vld [vmem:[#allocation2 + $0xcc] ss:$16 sps:$4 sm:$0xff]  }
  0x30   :  { %v2525_v26 = vld [vmem:[#allocation2 + $0xc0] ss:$16 sps:$4 sm:$0xff]   ;;  %v2526_v27 = vld [vmem:[#allocation2 + $0xc8] ss:$16 sps:$4 sm:$0xff]   ;;  %v2527_v28 = vld [vmem:[#allocation2 + $0xe4] ss:$16 sps:$4 sm:$0xff]  }
  0x31   :  { %1450 = vmatpush1.bf16.msra.mxu0 %v2501_v10  ;;  %1614 = vmatpush1.bf16.msra.mxu1 %v2502_v11  ;;  %v2529_v29 = vld [vmem:[#allocation2 + $0xec] ss:$16 sps:$4 sm:$0xff]   ;;  %v2531_v30 = vld [vmem:[#allocation2 + $0xe0] ss:$16 sps:$4 sm:$0xff]   ;;  %v2532_v31 = vld [vmem:[#allocation2 + $0xe8] ss:$16 sps:$4 sm:$0xff]  }
  0x32   :  { %1451 = vmatprep.subr.bf16.mxu0 %v2503_v12  ;;  %1615 = vmatprep.subr.bf16.mxu1 %v2505_v13  ;;  %v2533_v32 = vld [vmem:[#allocation2 + $0x104] ss:$16 sps:$4 sm:$0xff]   ;;  %v2535_v33 = vld [vmem:[#allocation2 + $0x10c] ss:$16 sps:$4 sm:$0xff]   ;;  %v2537_v34 = vld [vmem:[#allocation2 + $0x100] ss:$16 sps:$4 sm:$0xff]  }
  0x33   :  { %v2538_v35 = vld [vmem:[#allocation2 + $0x108] ss:$16 sps:$4 sm:$0xff]   ;;  %v2539_v36 = vld [vmem:[#allocation2 + $0x124] ss:$16 sps:$4 sm:$0xff]   ;;  %v2541_v37 = vld [vmem:[#allocation2 + $0x12c] ss:$16 sps:$4 sm:$0xff]  }
  0x34   :  { %v2543_v38 = vld [vmem:[#allocation2 + $0x120] ss:$16 sps:$4 sm:$0xff]   ;;  %v2544_v39 = vld [vmem:[#allocation2 + $0x128] ss:$16 sps:$4 sm:$0xff]   ;;  %v2545_v40 = vld [vmem:[#allocation2 + $0x144] ss:$16 sps:$4 sm:$0xff]  }
  0x35   :  { %1452 = vmatpush1.bf16.msra.mxu0 %v2507_v14  ;;  %1616 = vmatpush1.bf16.msra.mxu1 %v2508_v15  ;;  %v2547_v41 = vld [vmem:[#allocation2 + $0x14c] ss:$16 sps:$4 sm:$0xff]   ;;  %v2549_v42 = vld [vmem:[#allocation2 + $0x140] ss:$16 sps:$4 sm:$0xff]   ;;  %v2550_v43 = vld [vmem:[#allocation2 + $0x148] ss:$16 sps:$4 sm:$0xff]  }
  0x36   :  { %1453 = vmatprep.subr.bf16.mxu0 %v2509_v16  ;;  %1617 = vmatprep.subr.bf16.mxu1 %v2511_v17  ;;  %v2551_v44 = vld [vmem:[#allocation2 + $0x164] ss:$16 sps:$4 sm:$0xff]   ;;  %v2553_v45 = vld [vmem:[#allocation2 + $0x16c] ss:$16 sps:$4 sm:$0xff]   ;;  %v2555_v47 = vld [vmem:[#allocation2 + $0x160] ss:$16 sps:$4 sm:$0xff]  }
  0x37   :  { %v50_v46 = vld [vmem:[%s3036_s0] sm:$0xff]  ;;  %v2556_v49 = vld [vmem:[#allocation2 + $0x168] ss:$16 sps:$4 sm:$0xff]   ;;  %v2559_v51 = vld [vmem:[#allocation2 + $0x18c] ss:$16 sps:$4 sm:$0xff]   ;;  %s2939_s29 = smov [#allocation7]  }
  0x38   :  { %v2142_v48 = vcombine.high %v50_v46, %v50_v46  ;;  %v2557_v50 = vld [vmem:[#allocation2 + $0x184] ss:$16 sps:$4 sm:$0xff]   ;;  %v2561_v52 = vld [vmem:[#allocation2 + $0x180] ss:$16 sps:$4 sm:$0xff]   ;;  %v2562_v53 = vld [vmem:[#allocation2 + $0x188] ss:$16 sps:$4 sm:$0xff]   ;;  %v2141_v4 = vcombine.low %v50_v46, %v50_v46 }
  0x39   :  { %1454 = vmatpush1.bf16.msra.mxu0 %v2513_v18  ;;  %1618 = vmatpush1.bf16.msra.mxu1 %v2514_v19  ;;  %v2563_v54 = vld [vmem:[#allocation2 + $0x1a4] ss:$16 sps:$4 sm:$0xff]   ;;  %v2565_v55 = vld [vmem:[#allocation2 + $0x1ac] ss:$16 sps:$4 sm:$0xff]   ;;  %v2567_v56 = vld [vmem:[#allocation2 + $0x1a0] ss:$16 sps:$4 sm:$0xff]  }
  0x3a   :  { %1455 = vmatprep.subr.bf16.mxu0 %v2515_v20  ;;  %1619 = vmatprep.subr.bf16.mxu1 %v2517_v21  ;;  %v2568_v57 = vld [vmem:[#allocation2 + $0x1a8] ss:$16 sps:$4 sm:$0xff]   ;;  %v2569_v58 = vld [vmem:[#allocation2 + $0x1c4] ss:$16 sps:$4 sm:$0xff]   ;;  %v2571_v59 = vld [vmem:[#allocation2 + $0x1cc] ss:$16 sps:$4 sm:$0xff]  }
  0x3b   :  { %1477 = vmatprep.mubr.bf16.mxu0 %v2142_v48  ;;  %1641 = vmatprep.mubr.bf16.mxu1 %v2142_v48  ;;  %v2573_v60 = vld [vmem:[#allocation2 + $0x1c0] ss:$16 sps:$4 sm:$0xff]   ;;  %v2574_v61 = vld [vmem:[#allocation2 + $0x1c8] ss:$16 sps:$4 sm:$0xff]   ;;  %v2575_v62 = vld [vmem:[#allocation2 + $0x1e4] ss:$16 sps:$4 sm:$0xff]  }
  0x3c   :  { %v2577_v63 = vld [vmem:[#allocation2 + $0x1ec] ss:$16 sps:$4 sm:$0xff]   ;;  %v2579_v0 = vld [vmem:[#allocation2 + $0x1e0] ss:$16 sps:$4 sm:$0xff]   ;;  %v2580_v1 = vld [vmem:[#allocation2 + $0x1e8] ss:$16 sps:$4 sm:$0xff]  }
  0x3d   :  { %1456 = vmatpush1.bf16.msra.mxu0 %v2519_v22  ;;  %1620 = vmatpush1.bf16.msra.mxu1 %v2520_v23  ;;  %v2585_v2 = vld [vmem:[#allocation2 + $0x204] ss:$16 sps:$4 sm:$0xff]   ;;  %v2588_v3 = vld [vmem:[#allocation2 + $0x20c] ss:$16 sps:$4 sm:$0xff]   ;;  %v2583_v5 = vld [vmem:[#allocation2 + $0x200] ss:$16 sps:$4 sm:$0xff]  }
  0x3e   :  { %1457 = vmatprep.subr.bf16.mxu0 %v2521_v24  ;;  %1621 = vmatprep.subr.bf16.mxu1 %v2523_v25  ;;  %v2586_v6 = vld [vmem:[#allocation2 + $0x208] ss:$16 sps:$4 sm:$0xff]   ;;  %v2591_v7 = vld [vmem:[#allocation2 + $0x224] ss:$16 sps:$4 sm:$0xff]   ;;  %v2594_v8 = vld [vmem:[#allocation2 + $0x22c] ss:$16 sps:$4 sm:$0xff]  }
  0x3f   :  { %v2589_v9 = vld [vmem:[#allocation2 + $0x220] ss:$16 sps:$4 sm:$0xff]   ;;  %v2592_v10 = vld [vmem:[#allocation2 + $0x228] ss:$16 sps:$4 sm:$0xff]   ;;  %v2597_v11 = vld [vmem:[#allocation2 + $0x244] ss:$16 sps:$4 sm:$0xff]  }
  0x40   :  { %v2600_v12 = vld [vmem:[#allocation2 + $0x24c] ss:$16 sps:$4 sm:$0xff]   ;;  %v2595_v13 = vld [vmem:[#allocation2 + $0x240] ss:$16 sps:$4 sm:$0xff]   ;;  %v2598_v14 = vld [vmem:[#allocation2 + $0x248] ss:$16 sps:$4 sm:$0xff]  }
  0x41   :  { %1458 = vmatpush1.bf16.msra.mxu0 %v2525_v26  ;;  %1622 = vmatpush1.bf16.msra.mxu1 %v2526_v27  ;;  %v2603_v15 = vld [vmem:[#allocation2 + $0x264] ss:$16 sps:$4 sm:$0xff]   ;;  %v2606_v16 = vld [vmem:[#allocation2 + $0x26c] ss:$16 sps:$4 sm:$0xff]   ;;  %v2601_v17 = vld [vmem:[#allocation2 + $0x260] ss:$16 sps:$4 sm:$0xff]  }
  0x42   :  { %1459 = vmatprep.subr.bf16.mxu0 %v2527_v28  ;;  %1623 = vmatprep.subr.bf16.mxu1 %v2529_v29  ;;  %v2604_v18 = vld [vmem:[#allocation2 + $0x268] ss:$16 sps:$4 sm:$0xff]   ;;  %v2609_v19 = vld [vmem:[#allocation2 + $0x284] ss:$16 sps:$4 sm:$0xff]   ;;  %v2612_v20 = vld [vmem:[#allocation2 + $0x28c] ss:$16 sps:$4 sm:$0xff]  }
  0x43   :  { %v2607_v21 = vld [vmem:[#allocation2 + $0x280] ss:$16 sps:$4 sm:$0xff]   ;;  %v2610_v22 = vld [vmem:[#allocation2 + $0x288] ss:$16 sps:$4 sm:$0xff]   ;;  %v2615_v23 = vld [vmem:[#allocation2 + $0x2a4] ss:$16 sps:$4 sm:$0xff]  }
  0x44   :  { %v2618_v24 = vld [vmem:[#allocation2 + $0x2ac] ss:$16 sps:$4 sm:$0xff]   ;;  %v2613_v25 = vld [vmem:[#allocation2 + $0x2a0] ss:$16 sps:$4 sm:$0xff]   ;;  %v2616_v26 = vld [vmem:[#allocation2 + $0x2a8] ss:$16 sps:$4 sm:$0xff]  }
  0x45   :  { %1460 = vmatpush1.bf16.msra.mxu0 %v2531_v30  ;;  %1624 = vmatpush1.bf16.msra.mxu1 %v2532_v31  ;;  %v2621_v27 = vld [vmem:[#allocation2 + $0x2c4] ss:$16 sps:$4 sm:$0xff]   ;;  %v2624_v28 = vld [vmem:[#allocation2 + $0x2cc] ss:$16 sps:$4 sm:$0xff]   ;;  %v2619_v31 = vld [vmem:[#allocation2 + $0x2c0] ss:$16 sps:$4 sm:$0xff]  }
  0x46   :  { %1461 = vmatprep.subr.bf16.mxu0 %v2533_v32  ;;  %1625 = vmatprep.subr.bf16.mxu1 %v2535_v33  ;;  %v3000_v29 = vld [vmem:[%s3036_s0 + $0x8] sm:$0xff]  ;;  %v2627_v33 = vld [vmem:[#allocation2 + $0x2e4] ss:$16 sps:$4 sm:$0xff]   ;;  %s2131_s30 = sshll.u32 %s2939_s29, 4  ;;  %s2132_s30 = int_to_ptr.vmem [resolvable:$true] %s2131_s30 }
  0x47   :  { %v2144_v30 = vcombine.high %v3000_v29, %v3000_v29  ;;  %v2622_v32 = vld [vmem:[#allocation2 + $0x2c8] ss:$16 sps:$4 sm:$0xff]   ;;  %v2648_v46 = vld [vmem:[#allocation2 + $0x34c] ss:$16 sps:$4 sm:$0xff]   ;;  %s2904_s6 = scalar_lea.vmem %s2132_s30, 128  ;;  %p2909_p3 = scmp.lt.s32.totalorder %s2132_s30, %s2132_s30 }
  0x48   :  { %v2646_v48 = vld [vmem:[#allocation2 + $0x348] ss:$16 sps:$4 sm:$0xff]   ;;  %p2905_p2 = scmp.ne.s32.totalorder %s2132_s30, %s2904_s6  ;;  %p2910_p4 = scmp.lt.s32.totalorder %s2904_s6, %s2904_s6 }
  0x49   :  { %1462 = vmatpush1.bf16.msra.mxu0 %v2537_v34  ;;  %1626 = vmatpush1.bf16.msra.mxu1 %v2538_v35  ;;  %v2630_v34 = vld [vmem:[#allocation2 + $0x2ec] ss:$16 sps:$4 sm:$0xff]   ;;  %v2625_v35 = vld [vmem:[#allocation2 + $0x2e0] ss:$16 sps:$4 sm:$0xff]  }
  0x4a   :  { %1463 = vmatprep.subr.bf16.mxu0 %v2539_v36  ;;  %1627 = vmatprep.subr.bf16.mxu1 %v2541_v37  ;;  %v2628_v36 = vld [vmem:[#allocation2 + $0x2e8] ss:$16 sps:$4 sm:$0xff]   ;;  %v2633_v37 = vld [vmem:[#allocation2 + $0x304] ss:$16 sps:$4 sm:$0xff]   ;;  %p2911_p5 = por %p2910_p4, %p2909_p3 }
  0x4c   :  { %p2912_p6 = pnand %p2911_p5, %p2905_p2 }
  0x4d   :  { %1464 = vmatpush1.bf16.msra.mxu0 %v2543_v38  ;;  %1628 = vmatpush1.bf16.msra.mxu1 %v2544_v39  ;;  %v2636_v38 = vld [vmem:[#allocation2 + $0x30c] ss:$16 sps:$4 sm:$0xff]   ;;  %v2631_v39 = vld [vmem:[#allocation2 + $0x300] ss:$16 sps:$4 sm:$0xff]  }
  0x4e   :  { %1465 = vmatprep.subr.bf16.mxu0 %v2545_v40  ;;  %1629 = vmatprep.subr.bf16.mxu1 %v2547_v41  ;;  %v2634_v40 = vld [vmem:[#allocation2 + $0x308] ss:$16 sps:$4 sm:$0xff]   ;;  %v2639_v41 = vld [vmem:[#allocation2 + $0x324] ss:$16 sps:$4 sm:$0xff]  }
  0x51   :  { %1466 = vmatpush1.bf16.msra.mxu0 %v2549_v42  ;;  %1630 = vmatpush1.bf16.msra.mxu1 %v2550_v43  ;;  %v2642_v42 = vld [vmem:[#allocation2 + $0x32c] ss:$16 sps:$4 sm:$0xff]   ;;  %v2637_v43 = vld [vmem:[#allocation2 + $0x320] ss:$16 sps:$4 sm:$0xff]  }
  0x52   :  { %1467 = vmatprep.subr.bf16.mxu0 %v2551_v44  ;;  %1631 = vmatprep.subr.bf16.mxu1 %v2553_v45  ;;  %v2640_v44 = vld [vmem:[#allocation2 + $0x328] ss:$16 sps:$4 sm:$0xff]   ;;  %v2645_v45 = vld [vmem:[#allocation2 + $0x344] ss:$16 sps:$4 sm:$0xff]  }
  0x55   :  { %1468 = vmatpush1.bf16.msra.mxu0 %v2555_v47  ;;  %1632 = vmatpush1.bf16.msra.mxu1 %v2556_v49  ;;  %v2643_v47 = vld [vmem:[#allocation2 + $0x340] ss:$16 sps:$4 sm:$0xff]   ;;  %v2651_v49 = vld [vmem:[#allocation2 + $0x364] ss:$16 sps:$4 sm:$0xff]  }
  0x56   :  { %1469 = vmatprep.subr.bf16.mxu0 %v2557_v50  ;;  %1633 = vmatprep.subr.bf16.mxu1 %v2559_v51  ;;  %v2654_v50 = vld [vmem:[#allocation2 + $0x36c] ss:$16 sps:$4 sm:$0xff]   ;;  %v2649_v51 = vld [vmem:[#allocation2 + $0x360] ss:$16 sps:$4 sm:$0xff]  }
  0x59   :  { %1470 = vmatpush1.bf16.msra.mxu0 %v2561_v52  ;;  %1634 = vmatpush1.bf16.msra.mxu1 %v2562_v53  ;;  %v2652_v52 = vld [vmem:[#allocation2 + $0x368] ss:$16 sps:$4 sm:$0xff]   ;;  %v2657_v53 = vld [vmem:[#allocation2 + $0x384] ss:$16 sps:$4 sm:$0xff]  }
  0x5a   :  { %1471 = vmatprep.subr.bf16.mxu0 %v2563_v54  ;;  %1635 = vmatprep.subr.bf16.mxu1 %v2565_v55  ;;  %v2660_v54 = vld [vmem:[#allocation2 + $0x38c] ss:$16 sps:$4 sm:$0xff]   ;;  %v2655_v55 = vld [vmem:[#allocation2 + $0x380] ss:$16 sps:$4 sm:$0xff]  }
  0x5d   :  { %1472 = vmatpush1.bf16.msra.mxu0 %v2567_v56  ;;  %1636 = vmatpush1.bf16.msra.mxu1 %v2568_v57  ;;  %v2658_v56 = vld [vmem:[#allocation2 + $0x388] ss:$16 sps:$4 sm:$0xff]   ;;  %v2663_v57 = vld [vmem:[#allocation2 + $0x3a4] ss:$16 sps:$4 sm:$0xff]  }
  0x5e   :  { %1473 = vmatprep.subr.bf16.mxu0 %v2569_v58  ;;  %1637 = vmatprep.subr.bf16.mxu1 %v2571_v59  ;;  %v2666_v58 = vld [vmem:[#allocation2 + $0x3ac] ss:$16 sps:$4 sm:$0xff]   ;;  %v2661_v59 = vld [vmem:[#allocation2 + $0x3a0] ss:$16 sps:$4 sm:$0xff]  }
  0x61   :  { %1474 = vmatpush1.bf16.msra.mxu0 %v2573_v60  ;;  %1638 = vmatpush1.bf16.msra.mxu1 %v2574_v61  ;;  %v2664_v60 = vld [vmem:[#allocation2 + $0x3a8] ss:$16 sps:$4 sm:$0xff]   ;;  %v2669_v61 = vld [vmem:[#allocation2 + $0x3c4] ss:$16 sps:$4 sm:$0xff]  }
  0x62   :  { %1475 = vmatprep.subr.bf16.mxu0 %v2575_v62  ;;  %1639 = vmatprep.subr.bf16.mxu1 %v2577_v63  ;;  %v2672_v62 = vld [vmem:[#allocation2 + $0x3cc] ss:$16 sps:$4 sm:$0xff]   ;;  %v2667_v63 = vld [vmem:[#allocation2 + $0x3c0] ss:$16 sps:$4 sm:$0xff]  }
  0x65   :  { %1476 = vmatpush1.bf16.msra.mxu0 %v2579_v0  ;;  %1640 = vmatpush1.bf16.msra.mxu1 %v2580_v1  ;;  %v2670_v0 = vld [vmem:[#allocation2 + $0x3c8] ss:$16 sps:$4 sm:$0xff]   ;;  %v2675_v1 = vld [vmem:[#allocation2 + $0x3e4] ss:$16 sps:$4 sm:$0xff]  }
  0x66   :  { %1486 = vmatprep.subr.bf16.mxu0 %v2585_v2  ;;  %1650 = vmatprep.subr.bf16.mxu1 %v2588_v3  ;;  %v2678_v2 = vld [vmem:[#allocation2 + $0x3ec] ss:$16 sps:$4 sm:$0xff]   ;;  %v2673_v3 = vld [vmem:[#allocation2 + $0x3e0] ss:$16 sps:$4 sm:$0xff]  }
  0x68   :  { %1478 = vmatmul.mubr.bf16.vlgmr.msra.gmra.mrb[0].mxu0 %v2141_v4  ;;  %1642 = vmatmul.mubr.bf16.vlgmr.msra.gmra.mrb[0].mxu1 %v2141_v4  ;;  %v2676_v4 = vld [vmem:[#allocation2 + $0x3e8] ss:$16 sps:$4 sm:$0xff]  }
  0x69   :  { %1487 = vmatpush1.bf16.msra.mxu0 %v2583_v5  ;;  %1651 = vmatpush1.bf16.msra.mxu1 %v2586_v6  ;;  %v2683_v5 = vld [vmem:[#allocation2 + $0x404] ss:$16 sps:$4 sm:$0xff]   ;;  %v2686_v6 = vld [vmem:[#allocation2 + $0x40c] ss:$16 sps:$4 sm:$0xff]  }
  0x6a   :  { %1488 = vmatprep.subr.bf16.mxu0 %v2591_v7  ;;  %1652 = vmatprep.subr.bf16.mxu1 %v2594_v8  ;;  %v2143_v7 = vcombine.low %v3000_v29, %v3000_v29  ;;  %v2681_v8 = vld [vmem:[#allocation2 + $0x400] ss:$16 sps:$4 sm:$0xff]   ;;  %v2716_v29 = vld [vmem:[#allocation2 + $0x4ac] ss:$16 sps:$4 sm:$0xff]  }
  0x6b   :  { %1518 = vmatprep.mubr.bf16.mxu0 %v2144_v30  ;;  %1682 = vmatprep.mubr.bf16.mxu1 %v2144_v30  ;;  %v2711_v30 = vld [vmem:[#allocation2 + $0x4a0] ss:$16 sps:$4 sm:$0xff]  }
  0x6d   :  { %1489 = vmatpush1.bf16.msra.mxu0 %v2589_v9  ;;  %1653 = vmatpush1.bf16.msra.mxu1 %v2592_v10  ;;  %v2684_v9 = vld [vmem:[#allocation2 + $0x408] ss:$16 sps:$4 sm:$0xff]   ;;  %v2689_v10 = vld [vmem:[#allocation2 + $0x424] ss:$16 sps:$4 sm:$0xff]  }
  0x6e   :  { %1490 = vmatprep.subr.bf16.mxu0 %v2597_v11  ;;  %1654 = vmatprep.subr.bf16.mxu1 %v2600_v12  ;;  %v3009_v11 = vld [vmem:[%s3036_s0 + $0x10] sm:$0xff]  ;;  %v2692_v12 = vld [vmem:[#allocation2 + $0x42c] ss:$16 sps:$4 sm:$0xff]  }
  0x71   :  { %1491 = vmatpush1.bf16.msra.mxu0 %v2595_v13  ;;  %1655 = vmatpush1.bf16.msra.mxu1 %v2598_v14  ;;  %v2146_v13 = vcombine.high %v3009_v11, %v3009_v11  ;;  %v2687_v14 = vld [vmem:[#allocation2 + $0x420] ss:$16 sps:$4 sm:$0xff]  }
  0x72   :  { %1492 = vmatprep.subr.bf16.mxu0 %v2603_v15  ;;  %1656 = vmatprep.subr.bf16.mxu1 %v2606_v16  ;;  %v2690_v15 = vld [vmem:[#allocation2 + $0x428] ss:$16 sps:$4 sm:$0xff]   ;;  %v2695_v16 = vld [vmem:[#allocation2 + $0x444] ss:$16 sps:$4 sm:$0xff]  }
  0x75   :  { %1493 = vmatpush1.bf16.msra.mxu0 %v2601_v17  ;;  %1657 = vmatpush1.bf16.msra.mxu1 %v2604_v18  ;;  %v2698_v17 = vld [vmem:[#allocation2 + $0x44c] ss:$16 sps:$4 sm:$0xff]   ;;  %v2693_v18 = vld [vmem:[#allocation2 + $0x440] ss:$16 sps:$4 sm:$0xff]  }
  0x76   :  { %1494 = vmatprep.subr.bf16.mxu0 %v2609_v19  ;;  %1658 = vmatprep.subr.bf16.mxu1 %v2612_v20  ;;  %v2696_v19 = vld [vmem:[#allocation2 + $0x448] ss:$16 sps:$4 sm:$0xff]   ;;  %v2701_v20 = vld [vmem:[#allocation2 + $0x464] ss:$16 sps:$4 sm:$0xff]  }
  0x79   :  { %1495 = vmatpush1.bf16.msra.mxu0 %v2607_v21  ;;  %1659 = vmatpush1.bf16.msra.mxu1 %v2610_v22  ;;  %v2704_v21 = vld [vmem:[#allocation2 + $0x46c] ss:$16 sps:$4 sm:$0xff]   ;;  %v2699_v22 = vld [vmem:[#allocation2 + $0x460] ss:$16 sps:$4 sm:$0xff]  }
  0x7a   :  { %1496 = vmatprep.subr.bf16.mxu0 %v2615_v23  ;;  %1660 = vmatprep.subr.bf16.mxu1 %v2618_v24  ;;  %v2702_v23 = vld [vmem:[#allocation2 + $0x468] ss:$16 sps:$4 sm:$0xff]   ;;  %v2707_v24 = vld [vmem:[#allocation2 + $0x484] ss:$16 sps:$4 sm:$0xff]  }
  0x7d   :  { %1497 = vmatpush1.bf16.msra.mxu0 %v2613_v25  ;;  %1661 = vmatpush1.bf16.msra.mxu1 %v2616_v26  ;;  %v2710_v25 = vld [vmem:[#allocation2 + $0x48c] ss:$16 sps:$4 sm:$0xff]   ;;  %v2705_v26 = vld [vmem:[#allocation2 + $0x480] ss:$16 sps:$4 sm:$0xff]  }
  0x7e   :  { %1498 = vmatprep.subr.bf16.mxu0 %v2621_v27  ;;  %1662 = vmatprep.subr.bf16.mxu1 %v2624_v28  ;;  %v2708_v27 = vld [vmem:[#allocation2 + $0x488] ss:$16 sps:$4 sm:$0xff]   ;;  %v2713_v28 = vld [vmem:[#allocation2 + $0x4a4] ss:$16 sps:$4 sm:$0xff]  }
  0x81   :  { %1499 = vmatpush1.bf16.msra.mxu0 %v2619_v31  ;;  %1663 = vmatpush1.bf16.msra.mxu1 %v2622_v32  ;;  %v2714_v31 = vld [vmem:[#allocation2 + $0x4a8] ss:$16 sps:$4 sm:$0xff]   ;;  %v2719_v32 = vld [vmem:[#allocation2 + $0x4c4] ss:$16 sps:$4 sm:$0xff]  }
  0x82   :  { %1500 = vmatprep.subr.bf16.mxu0 %v2627_v33  ;;  %1664 = vmatprep.subr.bf16.mxu1 %v2630_v34  ;;  %v2722_v33 = vld [vmem:[#allocation2 + $0x4cc] ss:$16 sps:$4 sm:$0xff]   ;;  %v2717_v34 = vld [vmem:[#allocation2 + $0x4c0] ss:$16 sps:$4 sm:$0xff]  }
  0x85   :  { %1501 = vmatpush1.bf16.msra.mxu0 %v2625_v35  ;;  %1665 = vmatpush1.bf16.msra.mxu1 %v2628_v36  ;;  %v2720_v35 = vld [vmem:[#allocation2 + $0x4c8] ss:$16 sps:$4 sm:$0xff]   ;;  %v2725_v36 = vld [vmem:[#allocation2 + $0x4e4] ss:$16 sps:$4 sm:$0xff]  }
  0x86   :  { %1502 = vmatprep.subr.bf16.mxu0 %v2633_v37  ;;  %1666 = vmatprep.subr.bf16.mxu1 %v2636_v38  ;;  %v2728_v37 = vld [vmem:[#allocation2 + $0x4ec] ss:$16 sps:$4 sm:$0xff]   ;;  %v2723_v38 = vld [vmem:[#allocation2 + $0x4e0] ss:$16 sps:$4 sm:$0xff]  }
  0x89   :  { %1503 = vmatpush1.bf16.msra.mxu0 %v2631_v39  ;;  %1667 = vmatpush1.bf16.msra.mxu1 %v2634_v40  ;;  %v2726_v39 = vld [vmem:[#allocation2 + $0x4e8] ss:$16 sps:$4 sm:$0xff]   ;;  %v2731_v40 = vld [vmem:[#allocation2 + $0x504] ss:$16 sps:$4 sm:$0xff]  }
  0x8a   :  { %1504 = vmatprep.subr.bf16.mxu0 %v2639_v41  ;;  %1668 = vmatprep.subr.bf16.mxu1 %v2642_v42  ;;  %v2734_v41 = vld [vmem:[#allocation2 + $0x50c] ss:$16 sps:$4 sm:$0xff]   ;;  %v2729_v42 = vld [vmem:[#allocation2 + $0x500] ss:$16 sps:$4 sm:$0xff]  }
  0x8d   :  { %1505 = vmatpush1.bf16.msra.mxu0 %v2637_v43  ;;  %1669 = vmatpush1.bf16.msra.mxu1 %v2640_v44  ;;  %v2732_v43 = vld [vmem:[#allocation2 + $0x508] ss:$16 sps:$4 sm:$0xff]   ;;  %v2737_v44 = vld [vmem:[#allocation2 + $0x524] ss:$16 sps:$4 sm:$0xff]  }
  0x8e   :  { %1506 = vmatprep.subr.bf16.mxu0 %v2645_v45  ;;  %1670 = vmatprep.subr.bf16.mxu1 %v2648_v46  ;;  %v2740_v45 = vld [vmem:[#allocation2 + $0x52c] ss:$16 sps:$4 sm:$0xff]   ;;  %v2735_v46 = vld [vmem:[#allocation2 + $0x520] ss:$16 sps:$4 sm:$0xff]  }
  0x91   :  { %1507 = vmatpush1.bf16.msra.mxu0 %v2643_v47  ;;  %1671 = vmatpush1.bf16.msra.mxu1 %v2646_v48  ;;  %v2738_v47 = vld [vmem:[#allocation2 + $0x528] ss:$16 sps:$4 sm:$0xff]   ;;  %v2743_v48 = vld [vmem:[#allocation2 + $0x544] ss:$16 sps:$4 sm:$0xff]  }
  0x92   :  { %1508 = vmatprep.subr.bf16.mxu0 %v2651_v49  ;;  %1672 = vmatprep.subr.bf16.mxu1 %v2654_v50  ;;  %v2746_v49 = vld [vmem:[#allocation2 + $0x54c] ss:$16 sps:$4 sm:$0xff]   ;;  %v2741_v50 = vld [vmem:[#allocation2 + $0x540] ss:$16 sps:$4 sm:$0xff]  }
  0x95   :  { %1509 = vmatpush1.bf16.msra.mxu0 %v2649_v51  ;;  %1673 = vmatpush1.bf16.msra.mxu1 %v2652_v52  ;;  %v2744_v51 = vld [vmem:[#allocation2 + $0x548] ss:$16 sps:$4 sm:$0xff]   ;;  %v2749_v52 = vld [vmem:[#allocation2 + $0x564] ss:$16 sps:$4 sm:$0xff]  }
  0x96   :  { %1510 = vmatprep.subr.bf16.mxu0 %v2657_v53  ;;  %1674 = vmatprep.subr.bf16.mxu1 %v2660_v54  ;;  %v2752_v53 = vld [vmem:[#allocation2 + $0x56c] ss:$16 sps:$4 sm:$0xff]   ;;  %v2747_v54 = vld [vmem:[#allocation2 + $0x560] ss:$16 sps:$4 sm:$0xff]  }
  0x99   :  { %1511 = vmatpush1.bf16.msra.mxu0 %v2655_v55  ;;  %1675 = vmatpush1.bf16.msra.mxu1 %v2658_v56  ;;  %v2750_v55 = vld [vmem:[#allocation2 + $0x568] ss:$16 sps:$4 sm:$0xff]   ;;  %v2755_v56 = vld [vmem:[#allocation2 + $0x584] ss:$16 sps:$4 sm:$0xff]  }
  0x9a   :  { %1512 = vmatprep.subr.bf16.mxu0 %v2663_v57  ;;  %1676 = vmatprep.subr.bf16.mxu1 %v2666_v58  ;;  %v2758_v57 = vld [vmem:[#allocation2 + $0x58c] ss:$16 sps:$4 sm:$0xff]   ;;  %v2753_v58 = vld [vmem:[#allocation2 + $0x580] ss:$16 sps:$4 sm:$0xff]  }
  0x9d   :  { %1513 = vmatpush1.bf16.msra.mxu0 %v2661_v59  ;;  %1677 = vmatpush1.bf16.msra.mxu1 %v2664_v60  ;;  %v2756_v59 = vld [vmem:[#allocation2 + $0x588] ss:$16 sps:$4 sm:$0xff]   ;;  %v2761_v60 = vld [vmem:[#allocation2 + $0x5a4] ss:$16 sps:$4 sm:$0xff]  }
  0x9e   :  { %1514 = vmatprep.subr.bf16.mxu0 %v2669_v61  ;;  %1678 = vmatprep.subr.bf16.mxu1 %v2672_v62  ;;  %v2764_v61 = vld [vmem:[#allocation2 + $0x5ac] ss:$16 sps:$4 sm:$0xff]   ;;  %v2759_v62 = vld [vmem:[#allocation2 + $0x5a0] ss:$16 sps:$4 sm:$0xff]  }
  0xa1   :  { %1515 = vmatpush1.bf16.msra.mxu0 %v2667_v63  ;;  %1679 = vmatpush1.bf16.msra.mxu1 %v2670_v0  ;;  %v2762_v63 = vld [vmem:[#allocation2 + $0x5a8] ss:$16 sps:$4 sm:$0xff]   ;;  %v2767_v0 = vld [vmem:[#allocation2 + $0x5c4] ss:$16 sps:$4 sm:$0xff]  }
  0xa2   :  { %1516 = vmatprep.subr.bf16.mxu0 %v2675_v1  ;;  %1680 = vmatprep.subr.bf16.mxu1 %v2678_v2  ;;  %v2770_v1 = vld [vmem:[#allocation2 + $0x5cc] ss:$16 sps:$4 sm:$0xff]   ;;  %v2765_v2 = vld [vmem:[#allocation2 + $0x5c0] ss:$16 sps:$4 sm:$0xff]  }
  0xa5   :  { %1517 = vmatpush1.bf16.msra.mxu0 %v2673_v3  ;;  %1681 = vmatpush1.bf16.msra.mxu1 %v2676_v4  ;;  %v2768_v3 = vld [vmem:[#allocation2 + $0x5c8] ss:$16 sps:$4 sm:$0xff]   ;;  %v2773_v4 = vld [vmem:[#allocation2 + $0x5e4] ss:$16 sps:$4 sm:$0xff]  }
  0xa6   :  { %1527 = vmatprep.subr.bf16.mxu0 %v2683_v5  ;;  %1691 = vmatprep.subr.bf16.mxu1 %v2686_v6  ;;  %v2776_v5 = vld [vmem:[#allocation2 + $0x5ec] ss:$16 sps:$4 sm:$0xff]   ;;  %v2771_v6 = vld [vmem:[#allocation2 + $0x5e0] ss:$16 sps:$4 sm:$0xff]  }
  0xa8   :  { %1519 = vmatmul.mubr.bf16.vlgmr.msra.gmra.mrb[0].mxu0 %v2143_v7  ;;  %1683 = vmatmul.mubr.bf16.vlgmr.msra.gmra.mrb[0].mxu1 %v2143_v7  ;;  %v2774_v7 = vld [vmem:[#allocation2 + $0x5e8] ss:$16 sps:$4 sm:$0xff]  }
  0xa9   :  { %1528 = vmatpush1.bf16.msra.mxu0 %v2681_v8  ;;  %1692 = vmatpush1.bf16.msra.mxu1 %v2684_v9  ;;  %v2781_v8 = vld [vmem:[#allocation2 + $0x604] ss:$16 sps:$4 sm:$0xff]   ;;  %v2784_v9 = vld [vmem:[#allocation2 + $0x60c] ss:$16 sps:$4 sm:$0xff]  }
  0xaa   :  { %1529 = vmatprep.subr.bf16.mxu0 %v2689_v10  ;;  %1693 = vmatprep.subr.bf16.mxu1 %v2692_v12  ;;  %v2145_v10 = vcombine.low %v3009_v11, %v3009_v11  ;;  %v2779_v12 = vld [vmem:[#allocation2 + $0x600] ss:$16 sps:$4 sm:$0xff]  }
  0xab   :  { %1559 = vmatprep.mubr.bf16.mxu0 %v2146_v13  ;;  %1723 = vmatprep.mubr.bf16.mxu1 %v2146_v13  ;;  %v2782_v13 = vld [vmem:[#allocation2 + $0x608] ss:$16 sps:$4 sm:$0xff]   ;;  %v2791_v11 = vld [vmem:[#allocation2 + $0x640] ss:$16 sps:$4 sm:$0xff]  }
  0xad   :  { %1530 = vmatpush1.bf16.msra.mxu0 %v2687_v14  ;;  %1694 = vmatpush1.bf16.msra.mxu1 %v2690_v15  ;;  %v2787_v14 = vld [vmem:[#allocation2 + $0x624] ss:$16 sps:$4 sm:$0xff]   ;;  %v2790_v15 = vld [vmem:[#allocation2 + $0x62c] ss:$16 sps:$4 sm:$0xff]  }
  0xae   :  { %1531 = vmatprep.subr.bf16.mxu0 %v2695_v16  ;;  %1695 = vmatprep.subr.bf16.mxu1 %v2698_v17  ;;  %v2785_v16 = vld [vmem:[#allocation2 + $0x620] ss:$16 sps:$4 sm:$0xff]   ;;  %v2788_v17 = vld [vmem:[#allocation2 + $0x628] ss:$16 sps:$4 sm:$0xff]  }
  0xb1   :  { %1532 = vmatpush1.bf16.msra.mxu0 %v2693_v18  ;;  %1696 = vmatpush1.bf16.msra.mxu1 %v2696_v19  ;;  %v2793_v18 = vld [vmem:[#allocation2 + $0x644] ss:$16 sps:$4 sm:$0xff]   ;;  %v2796_v19 = vld [vmem:[#allocation2 + $0x64c] ss:$16 sps:$4 sm:$0xff]  }
  0xb2   :  { %1533 = vmatprep.subr.bf16.mxu0 %v2701_v20  ;;  %1697 = vmatprep.subr.bf16.mxu1 %v2704_v21  ;;  %v2938_v20 = vmov 0   ;;  %v2794_v21 = vld [vmem:[#allocation2 + $0x648] ss:$16 sps:$4 sm:$0xff]  }
  0xb5   :  { %1534 = vmatpush1.bf16.msra.mxu0 %v2699_v22  ;;  %1698 = vmatpush1.bf16.msra.mxu1 %v2702_v23  ;;  %v2799_v22 = vld [vmem:[#allocation2 + $0x664] ss:$16 sps:$4 sm:$0xff]   ;;  %v2802_v23 = vld [vmem:[#allocation2 + $0x66c] ss:$16 sps:$4 sm:$0xff]  }
  0xb6   :  { %1535 = vmatprep.subr.bf16.mxu0 %v2707_v24  ;;  %1699 = vmatprep.subr.bf16.mxu1 %v2710_v25  ;;  %v2797_v24 = vld [vmem:[#allocation2 + $0x660] ss:$16 sps:$4 sm:$0xff]   ;;  %v2800_v25 = vld [vmem:[#allocation2 + $0x668] ss:$16 sps:$4 sm:$0xff]  }
  0xb9   :  { %1536 = vmatpush1.bf16.msra.mxu0 %v2705_v26  ;;  %1700 = vmatpush1.bf16.msra.mxu1 %v2708_v27  ;;  %v2805_v26 = vld [vmem:[#allocation2 + $0x684] ss:$16 sps:$4 sm:$0xff]   ;;  %v2808_v27 = vld [vmem:[#allocation2 + $0x68c] ss:$16 sps:$4 sm:$0xff]  }
  0xba   :  { %1537 = vmatprep.subr.bf16.mxu0 %v2713_v28  ;;  %1701 = vmatprep.subr.bf16.mxu1 %v2716_v29  ;;  %v2803_v28 = vld [vmem:[#allocation2 + $0x680] ss:$16 sps:$4 sm:$0xff]   ;;  %v2806_v29 = vld [vmem:[#allocation2 + $0x688] ss:$16 sps:$4 sm:$0xff]  }
  0xbd   :  { %1538 = vmatpush1.bf16.msra.mxu0 %v2711_v30  ;;  %1702 = vmatpush1.bf16.msra.mxu1 %v2714_v31  ;;  %v2811_v30 = vld [vmem:[#allocation2 + $0x6a4] ss:$16 sps:$4 sm:$0xff]   ;;  %v2814_v31 = vld [vmem:[#allocation2 + $0x6ac] ss:$16 sps:$4 sm:$0xff]  }
  0xbe   :  { %1539 = vmatprep.subr.bf16.mxu0 %v2719_v32  ;;  %1703 = vmatprep.subr.bf16.mxu1 %v2722_v33  ;;  %v2809_v32 = vld [vmem:[#allocation2 + $0x6a0] ss:$16 sps:$4 sm:$0xff]   ;;  %v2812_v33 = vld [vmem:[#allocation2 + $0x6a8] ss:$16 sps:$4 sm:$0xff]  }
  0xc1   :  { %1540 = vmatpush1.bf16.msra.mxu0 %v2717_v34  ;;  %1704 = vmatpush1.bf16.msra.mxu1 %v2720_v35  ;;  %v2817_v34 = vld [vmem:[#allocation2 + $0x6c4] ss:$16 sps:$4 sm:$0xff]   ;;  %v2820_v35 = vld [vmem:[#allocation2 + $0x6cc] ss:$16 sps:$4 sm:$0xff]  }
  0xc2   :  { %1541 = vmatprep.subr.bf16.mxu0 %v2725_v36  ;;  %1705 = vmatprep.subr.bf16.mxu1 %v2728_v37  ;;  %v2815_v36 = vld [vmem:[#allocation2 + $0x6c0] ss:$16 sps:$4 sm:$0xff]   ;;  %v2818_v37 = vld [vmem:[#allocation2 + $0x6c8] ss:$16 sps:$4 sm:$0xff]  }
  0xc5   :  { %1542 = vmatpush1.bf16.msra.mxu0 %v2723_v38  ;;  %1706 = vmatpush1.bf16.msra.mxu1 %v2726_v39  ;;  %v2823_v38 = vld [vmem:[#allocation2 + $0x6e4] ss:$16 sps:$4 sm:$0xff]   ;;  %v2826_v39 = vld [vmem:[#allocation2 + $0x6ec] ss:$16 sps:$4 sm:$0xff]  }
  0xc6   :  { %1543 = vmatprep.subr.bf16.mxu0 %v2731_v40  ;;  %1707 = vmatprep.subr.bf16.mxu1 %v2734_v41  ;;  %v2821_v40 = vld [vmem:[#allocation2 + $0x6e0] ss:$16 sps:$4 sm:$0xff]   ;;  %v2824_v41 = vld [vmem:[#allocation2 + $0x6e8] ss:$16 sps:$4 sm:$0xff]  }
  0xc9   :  { %1544 = vmatpush1.bf16.msra.mxu0 %v2729_v42  ;;  %1708 = vmatpush1.bf16.msra.mxu1 %v2732_v43  ;;  %v2828_v42 = vld [vmem:[#allocation5 + $0x40] sm:$0xff]  }
  0xca   :  { %1545 = vmatprep.subr.bf16.mxu0 %v2737_v44  ;;  %1709 = vmatprep.subr.bf16.mxu1 %v2740_v45  ;;  %v2829_v43 = vld [vmem:[#allocation5 + $0xc0] sm:$0xff]   ;;  %v2827_v44 = vld [vmem:[%s3036_s0 + $0x18] ss:$0 sps:$4 sm:$0xff]  }
  0xcb   :  { %v2830_v45 = vld [vmem:[#allocation5] sm:$0xff]  }
  0xcd   :  { %1546 = vmatpush1.bf16.msra.mxu0 %v2735_v46  ;;  %1710 = vmatpush1.bf16.msra.mxu1 %v2738_v47  ;;  %v2831_v46 = vld [vmem:[#allocation5 + $0x80] sm:$0xff]   ;;  %v2832_v47 = vld [vmem:[#allocation5 + $0x48] sm:$0xff]  }
  0xce   :  { %1547 = vmatprep.subr.bf16.mxu0 %v2743_v48  ;;  %1711 = vmatprep.subr.bf16.mxu1 %v2746_v49  ;;  %v2833_v48 = vld [vmem:[#allocation5 + $0xc8] sm:$0xff]  }
  0xcf   :  { %v2834_v49 = vld [vmem:[#allocation5 + $0x8] sm:$0xff]  }
  0xd1   :  { %1548 = vmatpush1.bf16.msra.mxu0 %v2741_v50  ;;  %1712 = vmatpush1.bf16.msra.mxu1 %v2744_v51  ;;  %v2835_v50 = vld [vmem:[#allocation5 + $0x88] sm:$0xff]   ;;  %v2836_v51 = vld [vmem:[#allocation5 + $0x50] sm:$0xff]  }
  0xd2   :  { %1549 = vmatprep.subr.bf16.mxu0 %v2749_v52  ;;  %1713 = vmatprep.subr.bf16.mxu1 %v2752_v53  ;;  %v2837_v52 = vld [vmem:[#allocation5 + $0xd0] sm:$0xff]  }
  0xd3   :  { %v2838_v53 = vld [vmem:[#allocation5 + $0x10] sm:$0xff]  }
  0xd5   :  { %1550 = vmatpush1.bf16.msra.mxu0 %v2747_v54  ;;  %1714 = vmatpush1.bf16.msra.mxu1 %v2750_v55  ;;  %v2839_v54 = vld [vmem:[#allocation5 + $0x90] sm:$0xff]   ;;  %v2840_v55 = vld [vmem:[#allocation5 + $0x58] sm:$0xff]  }
  0xd6   :  { %1551 = vmatprep.subr.bf16.mxu0 %v2755_v56  ;;  %1715 = vmatprep.subr.bf16.mxu1 %v2758_v57  ;;  %v2841_v56 = vld [vmem:[#allocation5 + $0xd8] sm:$0xff]  }
  0xd7   :  { %v2842_v57 = vld [vmem:[#allocation5 + $0x18] sm:$0xff]  }
  0xd9   :  { %1552 = vmatpush1.bf16.msra.mxu0 %v2753_v58  ;;  %1716 = vmatpush1.bf16.msra.mxu1 %v2756_v59  ;;  %v2843_v58 = vld [vmem:[#allocation5 + $0x98] sm:$0xff]   ;;  %v2844_v59 = vld [vmem:[#allocation5 + $0x60] sm:$0xff]  }
  0xda   :  { %1553 = vmatprep.subr.bf16.mxu0 %v2761_v60  ;;  %1717 = vmatprep.subr.bf16.mxu1 %v2764_v61  ;;  %v2845_v60 = vld [vmem:[#allocation5 + $0xe0] sm:$0xff]  }
  0xdb   :  { %v2846_v61 = vld [vmem:[#allocation5 + $0x20] sm:$0xff]  }
  0xdd   :  { %1554 = vmatpush1.bf16.msra.mxu0 %v2759_v62  ;;  %1718 = vmatpush1.bf16.msra.mxu1 %v2762_v63  ;;  %v2847_v62 = vld [vmem:[#allocation5 + $0xa0] sm:$0xff]   ;;  %v2848_v63 = vld [vmem:[#allocation5 + $0x68] sm:$0xff]  }
  0xde   :  { %1555 = vmatprep.subr.bf16.mxu0 %v2767_v0  ;;  %1719 = vmatprep.subr.bf16.mxu1 %v2770_v1  ;;  %v2849_v0 = vld [vmem:[#allocation5 + $0xe8] sm:$0xff]  }
  0xdf   :  { %v2850_v1 = vld [vmem:[#allocation5 + $0x28] sm:$0xff]  }
  0xe1   :  { %1556 = vmatpush1.bf16.msra.mxu0 %v2765_v2  ;;  %1720 = vmatpush1.bf16.msra.mxu1 %v2768_v3  ;;  %v2851_v2 = vld [vmem:[#allocation5 + $0xa8] sm:$0xff]   ;;  %v2852_v3 = vld [vmem:[#allocation5 + $0x70] sm:$0xff]  }
  0xe2   :  { %1557 = vmatprep.subr.bf16.mxu0 %v2773_v4  ;;  %1721 = vmatprep.subr.bf16.mxu1 %v2776_v5  ;;  %v2853_v4 = vld [vmem:[#allocation5 + $0xf0] sm:$0xff]  }
  0xe3   :  { %v2854_v5 = vld [vmem:[#allocation5 + $0x30] sm:$0xff]  }
  0xe5   :  { %1558 = vmatpush1.bf16.msra.mxu0 %v2771_v6  ;;  %1722 = vmatpush1.bf16.msra.mxu1 %v2774_v7  ;;  %v2855_v6 = vld [vmem:[#allocation5 + $0xb0] sm:$0xff]   ;;  %v2856_v7 = vld [vmem:[#allocation5 + $0x78] sm:$0xff]  }
  0xe6   :  { %1568 = vmatprep.subr.bf16.mxu0 %v2781_v8  ;;  %1732 = vmatprep.subr.bf16.mxu1 %v2784_v9  ;;  %v2857_v8 = vld [vmem:[#allocation5 + $0xf8] sm:$0xff]  }
  0xe7   :  { %v2858_v9 = vld [vmem:[#allocation5 + $0x38] sm:$0xff]  }
  0xe8   :  { %1560 = vmatmul.mubr.bf16.vlgmr.msra.gmra.mrb[0].mxu0 %v2145_v10  ;;  %1724 = vmatmul.mubr.bf16.vlgmr.msra.gmra.mrb[0].mxu1 %v2145_v10  ;;  %v2859_v10 = vld [vmem:[#allocation5 + $0xb8] sm:$0xff]  }
  0xe9   :  { %1569 = vmatpush1.bf16.msra.mxu0 %v2779_v12  ;;  %1733 = vmatpush1.bf16.msra.mxu1 %v2782_v13  ;;  %v280_v12 = vlaneseq }
  0xea   :  { %1570 = vmatprep.subr.bf16.mxu0 %v2787_v14  ;;  %1734 = vmatprep.subr.bf16.mxu1 %v2790_v15 }
  0xeb   :  { %1600 = vmatprep.mubr.bf16.mxu0 %v2938_v20  ;;  %1764 = vmatprep.mubr.bf16.mxu1 %v2938_v20  ;;  %v281_v13 = vshrl.u32 %v280_v12, 7 }
  0xed   :  { %1571 = vmatpush1.bf16.msra.mxu0 %v2785_v16  ;;  %1735 = vmatpush1.bf16.msra.mxu1 %v2788_v17  ;;  %v282_v14 = vsub.s32 0, %v281_v13  ;;  %v290_v15 = vsub.s32 2, %v281_v13  ;;  %v278_v16 = vld [vmem:[%s3038_s2] sm:$0xf]  ;;  %v286_v17 = vsub.s32 1, %v281_v13 }
  0xee   :  { %1572 = vmatprep.subr.bf16.mxu0 %v2793_v18  ;;  %1736 = vmatprep.subr.bf16.mxu1 %v2796_v19  ;;  %v294_v18 = vsub.s32 3, %v281_v13 }
  0xef   :  { %v283_v19 = vrot.slane %v278_v16, %v282_v14  ;;  %v291_v20 = vrot.slane %v278_v16, %v290_v15 }
  0xf1   :  { %1573 = vmatpush1.bf16.msra.mxu0 %v2791_v11  ;;  %1737 = vmatpush1.bf16.msra.mxu1 %v2794_v21  ;;  %v287_v11 = vrot.slane %v278_v16, %v286_v17  ;;  %v295_v21 = vrot.slane %v278_v16, %v294_v18 }
  0xf2   :  { %1574 = vmatprep.subr.bf16.mxu0 %v2799_v22  ;;  %1738 = vmatprep.subr.bf16.mxu1 %v2802_v23 }
  0xf5   :  { %1575 = vmatpush1.bf16.msra.mxu0 %v2797_v24  ;;  %1739 = vmatpush1.bf16.msra.mxu1 %v2800_v25 }
  0xf6   :  { %1576 = vmatprep.subr.bf16.mxu0 %v2805_v26  ;;  %1740 = vmatprep.subr.bf16.mxu1 %v2808_v27 }
  0xf9   :  { %1577 = vmatpush1.bf16.msra.mxu0 %v2803_v28  ;;  %1741 = vmatpush1.bf16.msra.mxu1 %v2806_v29 }
  0xfa   :  { %1578 = vmatprep.subr.bf16.mxu0 %v2811_v30  ;;  %1742 = vmatprep.subr.bf16.mxu1 %v2814_v31 }
  0xfd   :  { %1579 = vmatpush1.bf16.msra.mxu0 %v2809_v32  ;;  %1743 = vmatpush1.bf16.msra.mxu1 %v2812_v33 }
  0xfe   :  { %1580 = vmatprep.subr.bf16.mxu0 %v2817_v34  ;;  %1744 = vmatprep.subr.bf16.mxu1 %v2820_v35 }
 0x101   :  { %1581 = vmatpush1.bf16.msra.mxu0 %v2815_v36  ;;  %1745 = vmatpush1.bf16.msra.mxu1 %v2818_v37 }
 0x102   :  { %1582 = vmatprep.subr.bf16.mxu0 %v2823_v38  ;;  %1746 = vmatprep.subr.bf16.mxu1 %v2826_v39 }
 0x105   :  { %1583 = vmatpush1.bf16.msra.mxu0 %v2821_v40  ;;  %1747 = vmatpush1.bf16.msra.mxu1 %v2824_v41 }
 0x106   :  { %2405 = vmatprep.subr.bf16.mxu0 %v2828_v42  ;;  %2427 = vmatprep.subr.bf16.mxu1 %v2829_v43 }
 0x108   :  { %1601 = vmatmul.mubr.bf16.vlgmr.msra.gmra.mrb[0].mxu0 %v2827_v44  ;;  %1765 = vmatmul.mubr.bf16.vlgmr.msra.gmra.mrb[0].mxu1 %v2827_v44  ;;  %v2372_v44 = vld [vmem:[%s3040_s4] ss:$0 sm:$0xff] }
 0x109   :  { %2406 = vmatpush3.bf16.msra.mxu0 %v2830_v45  ;;  %2428 = vmatpush3.bf16.msra.mxu1 %v2831_v46 }
 0x10a   :  { %2407 = vmatprep.subr.bf16.mxu0 %v2832_v47  ;;  %2429 = vmatprep.subr.bf16.mxu1 %v2833_v48 }
 0x10d   :  { %2408 = vmatpush3.bf16.msra.mxu0 %v2834_v49  ;;  %2430 = vmatpush3.bf16.msra.mxu1 %v2835_v50 }
 0x10e   :  { %2409 = vmatprep.subr.bf16.mxu0 %v2836_v51  ;;  %2431 = vmatprep.subr.bf16.mxu1 %v2837_v52 }
 0x111   :  { %2410 = vmatpush3.bf16.msra.mxu0 %v2838_v53  ;;  %2432 = vmatpush3.bf16.msra.mxu1 %v2839_v54 }
 0x112   :  { %2411 = vmatprep.subr.bf16.mxu0 %v2840_v55  ;;  %2433 = vmatprep.subr.bf16.mxu1 %v2841_v56 }
 0x115   :  { %2412 = vmatpush3.bf16.msra.mxu0 %v2842_v57  ;;  %2434 = vmatpush3.bf16.msra.mxu1 %v2843_v58 }
 0x116   :  { %2413 = vmatprep.subr.bf16.mxu0 %v2844_v59  ;;  %2435 = vmatprep.subr.bf16.mxu1 %v2845_v60 }
 0x119   :  { %2414 = vmatpush3.bf16.msra.mxu0 %v2846_v61  ;;  %2436 = vmatpush3.bf16.msra.mxu1 %v2847_v62 }
 0x11a   :  { %2415 = vmatprep.subr.bf16.mxu0 %v2848_v63  ;;  %2437 = vmatprep.subr.bf16.mxu1 %v2849_v0 }
 0x11d   :  { %2416 = vmatpush3.bf16.msra.mxu0 %v2850_v1  ;;  %2438 = vmatpush3.bf16.msra.mxu1 %v2851_v2 }
 0x11e   :  { %2417 = vmatprep.subr.bf16.mxu0 %v2852_v3  ;;  %2439 = vmatprep.subr.bf16.mxu1 %v2853_v4 }
 0x121   :  { %2418 = vmatpush3.bf16.msra.mxu0 %v2854_v5  ;;  %2440 = vmatpush3.bf16.msra.mxu1 %v2855_v6 }
 0x122   :  { %2419 = vmatprep.subr.bf16.mxu0 %v2856_v7  ;;  %2441 = vmatprep.subr.bf16.mxu1 %v2857_v8 }
 0x125   :  { %2420 = vmatpush3.bf16.msra.mxu0 %v2858_v9  ;;  %2442 = vmatpush3.bf16.msra.mxu1 %v2859_v10 }
 0x1db   :  { %v1602_v22 = vpop.f32.mrb[0].mxu0  ;;  %v1766_v23 = vpop.f32.mrb[0].mxu1 }
 0x1dc   :  { %v2449_v24 = vadd.f32 %v1602_v22, %v283_v19  ;;  %v2451_v25 = vadd.f32 %v1766_v23, %v291_v20  ;;  %v1604_v26 = vpop.f32.mrb[1].mxu0  ;;  %v1768_v27 = vpop.f32.mrb[1].mxu1 }
 0x1dd   :  { %v2450_v28 = vadd.f32 %v1604_v26, %v287_v11  ;;  %v2452_v29 = vadd.f32 %v1768_v27, %v295_v21  ;;  %v1606_v30 = vpop.f32.mrb[2].mxu0  ;;  %v1770_v31 = vpop.f32.mrb[2].mxu1 }
 0x1de   :  { %v1773_v32 = vmax.f32 %v2449_v24, 0.0  ;;  %v1775_v33 = vmax.f32 %v2451_v25, 0.0  ;;  %v1607_v34 = vpop.f32.mrb[3].mxu0  ;;  %v1771_v35 = vpop.f32.mrb[3].mxu1 }
 0x1df   :  { %v1774_v36 = vmax.f32 %v2450_v28, 0.0  ;;  %v1776_v37 = vmax.f32 %v2452_v29, 0.0 }
 0x1e0   :  { %v1777_v40 = vpack.c.bf16 %v1773_v32, %v1773_v32  ;;  %v1779_v41 = vpack.c.bf16 %v1775_v33, %v1775_v33 }
 0x1e1   :  { %v1778_v38 = vpack.c.bf16 %v1774_v36, %v1774_v36  ;;  %v1780_v39 = vpack.c.bf16 %v1776_v37, %v1776_v37 }
 0x1e3   :  { %2076 = vmatprep.mubr.bf16.mxu0 %v1778_v38  ;;  %2116 = vmatprep.mubr.bf16.mxu1 %v1780_v39 }
 0x1e4   :  { %2077 = vmatmul.mubr.bf16.vlgmr.msra.gmra.mrb[4].mxu0 %v1777_v40  ;;  %2117 = vmatmul.mubr.bf16.vlgmr.msra.gmra.mrb[4].mxu1 %v1779_v41 }
 0x2b7   :  { %v2421_v42 = vpop.f32.mrb[4].mxu0  ;;  %v2443_v43 = vpop.f32.mrb[4].mxu1 }
 0x2b8   :  { %v2422_v45 = vpop.f32.mrb[5].mxu0  ;;  %v2444_v46 = vpop.f32.mrb[5].mxu1 }
 0x2b9   :  { %v2423_v47 = vadd.f32 %v2422_v45, %v2421_v42  ;;  %v2445_v48 = vadd.f32 %v2444_v46, %v2443_v43  ;;  %v2424_v49 = vpop.f32.mrb[6].mxu0  ;;  %v2446_v50 = vpop.f32.mrb[6].mxu1 }
 0x2ba   :  { %v2425_v51 = vpop.f32.mrb[7].mxu0  ;;  %v2447_v52 = vpop.f32.mrb[7].mxu1 }
 0x2bb   :  { %v2079_v53 = vadd.f32 %v2423_v47, %v2372_v44 }
 0x2bd   :  { %v2119_v54 = vadd.f32 %v2445_v48, %v2079_v53 }
 0x2bf   :  { %2124 = vst [vmem:[#allocation7] sm:$0xff] %v2119_v54 }
 0x2c0   :  { %2915 = shalt.err (!%p2912_p6)
}
 0x2c1   :  { %s2916_s8 = scalar_lea.hbm %s3041_s5, 128 }
 0x2c2   :  { %p2917_p7 = scmp.ne.s32.totalorder %s3041_s5, %s2916_s8  ;;  %p2920_p8 = scmp.lt.u32.totalorder %s2916_s8, %s3041_s5 }
 0x2c4   :  { %p2922_p9 = pnand %p2920_p8, %p2917_p7 }
 0x2c6   :  { %2925 = shalt.err (!%p2922_p9)
}
 0x2c7   :  { %2134 = dma.vmem_to_hbm [thread:$0]  %s2132_s30, 128, %s3041_s5, [#allocation4]  }
 0x2c8   :  { %2930 = dma.done.wait [#allocation4], 128  }
 0x2c9   :  { %2931 = vsyncadd [#allocation4], 4294967168 }
 0x2ca   :  { %2138 = vsyncpa [#allocation3], 1 }
 0x2cb   :  { %2139 = vsyncpa [#allocation6], 1 }
 0x2cc   :  { %2140 = vsyncpa [#allocation4], 1 }

</bundles_post_ra>
